<compile_context>
chip_gen: v7x
topology: tpu7x:2x2x1
jax: 0.10.0
libtpu: 0.0.40
codegen_flags: <defaults>
</compile_context>

<pallas_src>
import functools

import jax
import jax.numpy as jnp
import numpy as np
from jax.experimental import pallas as pl
from jax.experimental.pallas import tpu as pltpu


def _round_up(x, m):
    return (x + m - 1) // m * m


# ---------------------------------------------------------------------------
# Exact GELU (erf-based), built only from Mosaic-friendly elementwise ops.
# ---------------------------------------------------------------------------
_ERF_P = 0.3275911
_ERF_A1 = 0.254829592
_ERF_A2 = -0.284496736
_ERF_A3 = 1.421413741
_ERF_A4 = -1.453152027
_ERF_A5 = 1.061405429
_INV_SQRT2 = 0.7071067811865476


def _erf(z):
    # Abramowitz & Stegun 7.1.26, |error| <= 1.5e-7 (f32 roundoff level).
    a = jnp.abs(z)
    t = 1.0 / (1.0 + _ERF_P * a)
    poly = t * (_ERF_A1 + t * (_ERF_A2 + t * (_ERF_A3 + t * (_ERF_A4 + t * _ERF_A5))))
    e = 1.0 - poly * jnp.exp(-a * a)
    return jnp.where(z < 0.0, -e, e)


def _gelu_exact(x):
    return 0.5 * x * (1.0 + _erf(x * _INV_SQRT2))


# ---------------------------------------------------------------------------
# SDPLin: effective (Lipschitz-rescaled) weight — computed once in the wrapper.
# ---------------------------------------------------------------------------
def _sdp_effective_weight(weight, q, gamma):
    """weight: (heads, dim_head, cin), q: (heads, cin), gamma: (1,) -> (cout, cin)."""
    heads, dim_head, cin = weight.shape
    w = weight.astype(jnp.float32)
    q_ = q.astype(jnp.float32)[:, :, None]                       # (h, cin, 1)
    qe = jnp.exp(q_)
    qi = jnp.exp(-q_)
    wt = jnp.swapaxes(w, 1, 2)                                   # (h, cin, dim_head)
    m = jnp.einsum("hij,hjk->hik", qi * wt, w,
                   precision=jax.lax.Precision.HIGHEST)          # (h, cin, cin)
    m = m * qe / (gamma.astype(jnp.float32) ** 2)
    t = 1.0 / jnp.sum(jnp.abs(m), axis=2)                        # (h, cin)
    w_eff = w * jnp.sqrt(t)[:, None, :]                          # scale cin columns
    return w_eff.reshape(heads * dim_head, cin)                  # (cout, cin)


# ---------------------------------------------------------------------------
# Fused FFN kernel: out = gelu(x @ W1T + b1) @ W2T + b2, one row tile per step.
# ---------------------------------------------------------------------------
def _ffn_kernel(x_ref, w1t_ref, b1_ref, w2t_ref, b2_ref, o_ref):
    x = x_ref[...]
    h = jnp.dot(x, w1t_ref[...], preferred_element_type=jnp.float32)
    h = h + b1_ref[...]                      # bias add + GELU in f32
    h = _gelu_exact(h)
    h = h.astype(w2t_ref.dtype)              # back to MXU compute dtype
    out = jnp.dot(h, w2t_ref[...], preferred_element_type=jnp.float32)
    out = out + b2_ref[...]
    o_ref[...] = out.astype(o_ref.dtype)


@functools.partial(jax.jit, static_argnames=("block_m", "compute_dtype"))
def feedforward_forward(x, params, block_m=256, compute_dtype=jnp.bfloat16):
    """x: (..., dim). params: w1/b1/q1/gamma1 (dim->hidden) and w2/b2/q2/gamma2
    (hidden->dim); weights shaped (heads, dim_head, cin) as in the PyTorch module."""
    orig_shape = x.shape
    dim = params["w1"].shape[-1]
    hidden = params["w2"].shape[-1]
    assert orig_shape[-1] == dim

    # Hoisted, f32 Lipschitz rescale (the W/q-only work is done exactly once).
    w1_eff = _sdp_effective_weight(params["w1"], params["q1"], params["gamma1"])  # (hidden, dim)
    w2_eff = _sdp_effective_weight(params["w2"], params["q2"], params["gamma2"])  # (dim, hidden)

    # Pre-transposed, compute-dtype weights: no in-kernel transposes.
    w1t = w1_eff.T.astype(compute_dtype)          # (dim, hidden)
    w2t = w2_eff.T.astype(compute_dtype)          # (hidden, dim)
    b1 = params["b1"].reshape(1, hidden).astype(jnp.float32)
    b2 = params["b2"].reshape(1, dim).astype(jnp.float32)

    xf = x.reshape(-1, dim).astype(compute_dtype)
    n = xf.shape[0]

    # Row tile: multiple of 8 (f32 sublane), shrunk for tiny batches, padded so
    # any N works. NOTE: efficiency at dim < 128 is inherently lane-sparse.
    bm = _round_up(min(block_m, _round_up(n, 8)), 8)
    n_pad = _round_up(n, bm)
    if n_pad != n:
        xf = jnp.pad(xf, ((0, n_pad - n), (0, 0)))

    out = pl.pallas_call(
        _ffn_kernel,
        out_shape=jax.ShapeDtypeStruct((n_pad, dim), jnp.float32),
        grid_spec=pltpu.PrefetchScalarGridSpec(
            num_scalar_prefetch=0,
            grid=(n_pad // bm,),
            in_specs=[
                pl.BlockSpec((bm, dim), lambda i: (i, 0)),
                pl.BlockSpec((dim, hidden), lambda i: (0, 0)),   # grid-invariant
                pl.BlockSpec((1, hidden), lambda i: (0, 0)),     # grid-invariant
                pl.BlockSpec((hidden, dim), lambda i: (0, 0)),   # grid-invariant
                pl.BlockSpec((1, dim), lambda i: (0, 0)),        # grid-invariant
            ],
            out_specs=pl.BlockSpec((bm, dim), lambda i: (i, 0)),
        ),
        compiler_params=pltpu.CompilerParams(
            dimension_semantics=("parallel",),       # shards across v7x's 2 TCs
            vmem_limit_bytes=64 * 1024 * 1024,       # fits v5e/v6e; == v7x physical
        ),
    )(xf, w1t, b1, w2t, b2)

    return out[:n].reshape(orig_shape)


# ---------------------------------------------------------------------------
# Pure-JAX reference mirroring the PyTorch FeedForward (eval) forward.
# ---------------------------------------------------------------------------
def _reference(x2d, params):
    w1_eff = _sdp_effective_weight(params["w1"], params["q1"], params["gamma1"])
    w2_eff = _sdp_effective_weight(params["w2"], params["q2"], params["gamma2"])
    h = jnp.dot(x2d, w1_eff.T, precision=jax.lax.Precision.HIGHEST) + params["b1"]
    h = jax.nn.gelu(h, approximate=False)          # exact erf GELU == nn.GELU()
    out = jnp.dot(h, w2_eff.T, precision=jax.lax.Precision.HIGHEST) + params["b2"]
    return out


def _init_sdp_params(key, cin, cout, heads=1, gamma=1.0):
    """Mirrors SDPLin.__init__ initializers (xavier_normal_, uniform bias, rand q)."""
    dim_head = cout // heads
    kw, kb, kq = jax.random.split(key, 3)
    fan_in = dim_head * cin          # torch fan_in for a (heads, dim_head, cin) tensor
    fan_out = heads * cin
    std = float(np.sqrt(2.0 / (fan_in + fan_out)))
    weight = std * jax.random.normal(kw, (heads, dim_head, cin), dtype=jnp.float32)
    bound = 1.0 / float(np.sqrt(fan_in))
    bias = jax.random.uniform(kb, (cout,), minval=-bound, maxval=bound,
                              dtype=jnp.float32)
    q = jax.random.uniform(kq, (heads, cin), dtype=jnp.float32)
    return weight, bias, q, jnp.full((1,), gamma, dtype=jnp.float32)


if __name__ == "__main__":
    key = jax.random.PRNGKey(0)
    k_x, k_p1, k_p2 = jax.random.split(key, 3)

    batch, seq, dim, hidden = 2, 8, 32, 64
    x = jax.random.normal(k_x, (batch, seq, dim), dtype=jnp.float32)
    w1, b1, q1, g1 = _init_sdp_params(k_p1, cin=dim, cout=hidden)
    w2, b2, q2, g2 = _init_sdp_params(k_p2, cin=hidden, cout=dim)
    params = dict(w1=w1, b1=b1, q1=q1, gamma1=g1,
                  w2=w2, b2=b2, q2=q2, gamma2=g2)

    ref = _reference(x.reshape(-1, dim), params).reshape(x.shape)

    # f32 MXU path: tight check against the exact-GELU reference.
    out_f32 = feedforward_forward(x, params, block_m=256,
                                  compute_dtype=jnp.float32)
    out_f32 = jax.block_until_ready(out_f32)
    np.testing.assert_allclose(np.asarray(out_f32), np.asarray(ref),
                               rtol=5e-3, atol=5e-3)

    # bf16 MXU path (perf default): looser check (bf16 inputs, f32 accumulation).
    out_bf16 = feedforward_forward(x, params, block_m=256,
                                   compute_dtype=jnp.bfloat16)
    out_bf16 = jax.block_until_ready(out_bf16)
    np.testing.assert_allclose(np.asarray(out_bf16), np.asarray(ref),
                               rtol=5e-2, atol=5e-2)

    print("KERNEL_OK")
</pallas_src>

<mosaic_0001>
module attributes {stable_mosaic.version = 11 : i64} {
  func.func @_ffn_kernel(%arg0: i32, %arg1: memref<16x32xf32, #tpu.memory_space<vmem>>, %arg2: memref<32x64xf32, #tpu.memory_space<vmem>>, %arg3: memref<1x64xf32, #tpu.memory_space<vmem>>, %arg4: memref<64x32xf32, #tpu.memory_space<vmem>>, %arg5: memref<1x32xf32, #tpu.memory_space<vmem>>, %arg6: memref<16x32xf32, #tpu.memory_space<vmem>>) attributes {dimension_semantics = [#tpu.dimension_semantics<parallel>], iteration_bounds = array<i64: 1>, scalar_prefetch = 0 : i64, scratch_operands = 0 : i64, tpu.core_type = #tpu.core_type<tc>, window_params = [{transform_indices = @transform_0, window_bounds = array<i64: 16, 32>}, {pipeline_mode = #tpu.pipeline_mode<synchronous>, transform_indices = @transform_1, window_bounds = array<i64: 32, 64>}, {pipeline_mode = #tpu.pipeline_mode<synchronous>, transform_indices = @transform_2, window_bounds = array<i64: 1, 64>}, {pipeline_mode = #tpu.pipeline_mode<synchronous>, transform_indices = @transform_3, window_bounds = array<i64: 64, 32>}, {pipeline_mode = #tpu.pipeline_mode<synchronous>, transform_indices = @transform_4, window_bounds = array<i64: 1, 32>}, {transform_indices = @transform_5, window_bounds = array<i64: 16, 32>}]} {
    %c0 = arith.constant 0 : index
    %c0_0 = arith.constant 0 : index
    %0 = vector.load %arg1[%c0, %c0_0] : memref<16x32xf32, #tpu.memory_space<vmem>>, vector<16x32xf32>
    %c0_1 = arith.constant 0 : index
    %c0_2 = arith.constant 0 : index
    %1 = vector.load %arg2[%c0_1, %c0_2] : memref<32x64xf32, #tpu.memory_space<vmem>>, vector<32x64xf32>
    %cst = arith.constant dense<0.000000e+00> : vector<16x64xf32>
    %2 = tpu.matmul %0, %1, %cst {dimension_numbers = #tpu.dot_dimension_numbers<[1], [0], [0], [1], [0, 0, 1, 1], [], []>} : vector<16x32xf32>, vector<32x64xf32>, vector<16x64xf32> -> vector<16x64xf32>
    %c0_3 = arith.constant 0 : index
    %c0_4 = arith.constant 0 : index
    %3 = vector.load %arg3[%c0_3, %c0_4] : memref<1x64xf32, #tpu.memory_space<vmem>>, vector<1x64xf32>
    %4 = vector.broadcast %3 : vector<1x64xf32> to vector<16x64xf32>
    %5 = arith.addf %2, %4 : vector<16x64xf32>
    %cst_5 = arith.constant 5.000000e-01 : f32
    %6 = vector.broadcast %cst_5 : f32 to vector<16x64xf32>
    %7 = arith.mulf %6, %5 : vector<16x64xf32>
    %cst_6 = arith.constant 0.707106769 : f32
    %8 = vector.broadcast %cst_6 : f32 to vector<16x64xf32>
    %9 = arith.mulf %5, %8 : vector<16x64xf32>
    %10 = math.absf %9 : vector<16x64xf32>
    %cst_7 = arith.constant 0.327591091 : f32
    %11 = vector.broadcast %cst_7 : f32 to vector<16x64xf32>
    %12 = arith.mulf %11, %10 : vector<16x64xf32>
    %cst_8 = arith.constant 1.000000e+00 : f32
    %13 = vector.broadcast %cst_8 : f32 to vector<16x64xf32>
    %14 = arith.addf %13, %12 : vector<16x64xf32>
    %cst_9 = arith.constant 1.000000e+00 : f32
    %15 = vector.broadcast %cst_9 : f32 to vector<16x64xf32>
    %16 = arith.divf %15, %14 : vector<16x64xf32>
    %cst_10 = arith.constant 1.06140542 : f32
    %17 = vector.broadcast %cst_10 : f32 to vector<16x64xf32>
    %18 = arith.mulf %16, %17 : vector<16x64xf32>
    %cst_11 = arith.constant -1.45315206 : f32
    %19 = vector.broadcast %cst_11 : f32 to vector<16x64xf32>
    %20 = arith.addf %19, %18 : vector<16x64xf32>
    %21 = arith.mulf %16, %20 : vector<16x64xf32>
    %cst_12 = arith.constant 1.42141378 : f32
    %22 = vector.broadcast %cst_12 : f32 to vector<16x64xf32>
    %23 = arith.addf %22, %21 : vector<16x64xf32>
    %24 = arith.mulf %16, %23 : vector<16x64xf32>
    %cst_13 = arith.constant -0.284496725 : f32
    %25 = vector.broadcast %cst_13 : f32 to vector<16x64xf32>
    %26 = arith.addf %25, %24 : vector<16x64xf32>
    %27 = arith.mulf %16, %26 : vector<16x64xf32>
    %cst_14 = arith.constant 0.254829586 : f32
    %28 = vector.broadcast %cst_14 : f32 to vector<16x64xf32>
    %29 = arith.addf %28, %27 : vector<16x64xf32>
    %30 = arith.mulf %16, %29 : vector<16x64xf32>
    %cst_15 = arith.constant 0.000000e+00 : f32
    %31 = vector.broadcast %cst_15 : f32 to vector<16x64xf32>
    %32 = arith.subf %31, %10 : vector<16x64xf32>
    %33 = arith.mulf %32, %10 : vector<16x64xf32>
    %34 = math.exp %33 : vector<16x64xf32>
    %35 = arith.mulf %30, %34 : vector<16x64xf32>
    %cst_16 = arith.constant 1.000000e+00 : f32
    %36 = vector.broadcast %cst_16 : f32 to vector<16x64xf32>
    %37 = arith.subf %36, %35 : vector<16x64xf32>
    %cst_17 = arith.constant 0.000000e+00 : f32
    %38 = vector.broadcast %cst_17 : f32 to vector<16x64xf32>
    %39 = arith.cmpf olt, %9, %38 : vector<16x64xf32>
    %cst_18 = arith.constant 0.000000e+00 : f32
    %40 = vector.broadcast %cst_18 : f32 to vector<16x64xf32>
    %41 = arith.subf %40, %37 : vector<16x64xf32>
    %42 = arith.select %39, %41, %37 : vector<16x64xi1>, vector<16x64xf32>
    %cst_19 = arith.constant 1.000000e+00 : f32
    %43 = vector.broadcast %cst_19 : f32 to vector<16x64xf32>
    %44 = arith.addf %43, %42 : vector<16x64xf32>
    %45 = arith.mulf %7, %44 : vector<16x64xf32>
    %c0_20 = arith.constant 0 : index
    %c0_21 = arith.constant 0 : index
    %46 = vector.load %arg4[%c0_20, %c0_21] : memref<64x32xf32, #tpu.memory_space<vmem>>, vector<64x32xf32>
    %cst_22 = arith.constant dense<0.000000e+00> : vector<16x32xf32>
    %47 = tpu.matmul %45, %46, %cst_22 {dimension_numbers = #tpu.dot_dimension_numbers<[1], [0], [0], [1], [0, 0, 1, 1], [], []>} : vector<16x64xf32>, vector<64x32xf32>, vector<16x32xf32> -> vector<16x32xf32>
    %c0_23 = arith.constant 0 : index
    %c0_24 = arith.constant 0 : index
    %48 = vector.load %arg5[%c0_23, %c0_24] : memref<1x32xf32, #tpu.memory_space<vmem>>, vector<1x32xf32>
    %49 = vector.broadcast %48 : vector<1x32xf32> to vector<16x32xf32>
    %50 = arith.addf %47, %49 : vector<16x32xf32>
    %c0_25 = arith.constant 0 : index
    %c0_26 = arith.constant 0 : index
    %51 = vector.load %arg6[%c0_25, %c0_26] : memref<16x32xf32, #tpu.memory_space<vmem>>, vector<16x32xf32>
    tpu.vector_store %arg6[%c0_25, %c0_26], %50 {strides = array<i32>} : memref<16x32xf32, #tpu.memory_space<vmem>>, vector<16x32xf32>,
    return
  }
  func.func @transform_0(%arg0: i32) -> (i32, i32) {
    %c0_i32 = arith.constant 0 : i32
    %c0_i32_0 = arith.constant 0 : i32
    return %arg0, %c0_i32 : i32, i32
  }
  func.func @transform_1(%arg0: i32) -> (i32, i32) {
    %c0_i32 = arith.constant 0 : i32
    %c0_i32_0 = arith.constant 0 : i32
    %c0_i32_1 = arith.constant 0 : i32
    return %c0_i32, %c0_i32_0 : i32, i32
  }
  func.func @transform_2(%arg0: i32) -> (i32, i32) {
    %c0_i32 = arith.constant 0 : i32
    %c0_i32_0 = arith.constant 0 : i32
    %c0_i32_1 = arith.constant 0 : i32
    return %c0_i32, %c0_i32_0 : i32, i32
  }
  func.func @transform_3(%arg0: i32) -> (i32, i32) {
    %c0_i32 = arith.constant 0 : i32
    %c0_i32_0 = arith.constant 0 : i32
    %c0_i32_1 = arith.constant 0 : i32
    return %c0_i32, %c0_i32_0 : i32, i32
  }
  func.func @transform_4(%arg0: i32) -> (i32, i32) {
    %c0_i32 = arith.constant 0 : i32
    %c0_i32_0 = arith.constant 0 : i32
    %c0_i32_1 = arith.constant 0 : i32
    return %c0_i32, %c0_i32_0 : i32, i32
  }
  func.func @transform_5(%arg0: i32) -> (i32, i32) {
    %c0_i32 = arith.constant 0 : i32
    %c0_i32_0 = arith.constant 0 : i32
    return %arg0, %c0_i32 : i32, i32
  }
}

</mosaic_0001>

<bundles_post_ra>
// kernel: feedforward_forward.1
= control target key start
LH: loop header
LB: loop body
LE: loop exit
PB: predicated region body
PF: predicated region fallthrough
CT: control target
= control target key end

     0   :  { %10 = vsyncpa [#allocation3], 0  ;;  %s717_s0 = inlined_call_operand.hbm [shape: f32[16,32], index: 0, kind: input, shape index: {}]   ;;  %s718_s1 = inlined_call_operand.hbm [shape: f32[32,64], index: 1, kind: input, shape index: {}]   ;;  %s719_s2 = inlined_call_operand.hbm [shape: f32[1,64], index: 2, kind: input, shape index: {}]   ;;  %s720_s3 = inlined_call_operand.hbm [shape: f32[64,32], index: 3, kind: input, shape index: {}]   ;;  %s721_s4 = inlined_call_operand.hbm [shape: f32[1,32], index: 4, kind: input, shape index: {}]   ;;  %s722_s5 = inlined_call_operand.hbm [shape: f32[16,32], index: 5, kind: output, shape index: {}]  }
   0x1   :  { %11 = vsyncpa [#allocation6], 0 }
   0x2   :  { %12 = vsyncpa [#allocation9], 0 }
   0x3   :  { %13 = vsyncpa [#allocation4], 0  ;;  %s584_s18 = smov [#allocation5]   ;;  %s585_s20 = smov [#allocation8]  }
   0x4   :  { %s31_s19 = sshll.u32 %s584_s18, 4  ;;  %s53_s21 = sshll.u32 %s585_s20, 4  ;;  %s32_s19 = int_to_ptr.vmem [resolvable:$true] %s31_s19  ;;  %s622_s21 = int_to_ptr.vmem [resolvable:$true] %s53_s21 }
   0x5   :  { %s444_s24 = scalar_lea.hbm %s718_s1, 512 }
   0x6   :  { %p445_p0 = scmp.ne.s32.totalorder %s718_s1, %s444_s24  ;;  %p448_p1 = scmp.lt.u32.totalorder %s444_s24, %s718_s1 }
   0x8   :  { %p450_p2 = pnand %p448_p1, %p445_p0 }
   0xa   :  { %453 = shalt.err (!%p450_p2)
}
   0xb   :  { %s454_s29 = scalar_lea.vmem %s32_s19, 512  ;;  %p459_p4 = scmp.lt.s32.totalorder %s32_s19, %s32_s19 }
   0xc   :  { %p455_p3 = scmp.ne.s32.totalorder %s32_s19, %s454_s29  ;;  %p460_p5 = scmp.lt.s32.totalorder %s454_s29, %s454_s29 }
   0xe   :  { %p461_p6 = por %p460_p5, %p459_p4 }
  0x10   :  { %p462_p7 = pnand %p461_p6, %p455_p3 }
  0x12   :  { %465 = shalt.err (!%p462_p7)
}
  0x13   :  { %s586_s30 = smov 128   ;;  %s587_s6 = smov 8  }
  0x14   :  { %37 = dma.hbm_to_vmem [thread:$0]  %s718_s1, 512, %s32_s19, [#allocation6], %s586_s30, %s586_s30, %s587_s6  }
  0x15   :  { %s466_s11 = scalar_lea.hbm %s720_s3, 1024 }
  0x16   :  { %p467_p8 = scmp.ne.s32.totalorder %s720_s3, %s466_s11  ;;  %p470_p9 = scmp.lt.u32.totalorder %s466_s11, %s720_s3 }
  0x18   :  { %p472_p10 = pnand %p470_p9, %p467_p8 }
  0x1a   :  { %475 = shalt.err (!%p472_p10)
}
  0x1b   :  { %s476_s16 = scalar_lea.vmem %s622_s21, 1024  ;;  %p481_p12 = scmp.lt.s32.totalorder %s622_s21, %s622_s21 }
  0x1c   :  { %p477_p11 = scmp.ne.s32.totalorder %s622_s21, %s476_s16  ;;  %p482_p13 = scmp.lt.s32.totalorder %s476_s16, %s476_s16 }
  0x1e   :  { %p483_p0 = por %p482_p13, %p481_p12 }
  0x20   :  { %p484_p1 = pnand %p483_p0, %p477_p11 }
  0x22   :  { %487 = shalt.err (!%p484_p1)
}
  0x23   :  { %59 = dma.hbm_to_vmem [thread:$0]  %s720_s3, 1024, %s622_s21, [#allocation9], %s586_s30, %s586_s30, %s587_s6  }
  0x24   :  { %s588_s18 = smov [#allocation2]   ;;  %s589_s20 = smov [#allocation7]  }
  0x25   :  { %s19_s19 = sshll.u32 %s588_s18, 4  ;;  %s44_s22 = sshll.u32 %s589_s20, 4  ;;  %s20_s19 = int_to_ptr.vmem [resolvable:$true] %s19_s19  ;;  %s45_s22 = int_to_ptr.vmem [resolvable:$true] %s44_s22 }
  0x26   :  { %s488_s25 = scalar_lea.hbm %s717_s0, 256 }
  0x27   :  { %p489_p2 = scmp.ne.s32.totalorder %s717_s0, %s488_s25  ;;  %p492_p3 = scmp.lt.u32.totalorder %s488_s25, %s717_s0 }
  0x29   :  { %p494_p4 = pnand %p492_p3, %p489_p2 }
  0x2b   :  { %497 = shalt.err (!%p494_p4)
}
  0x2c   :  { %s498_s3 = scalar_lea.vmem %s20_s19, 256  ;;  %p503_p6 = scmp.lt.s32.totalorder %s20_s19, %s20_s19 }
  0x2d   :  { %p499_p5 = scmp.ne.s32.totalorder %s20_s19, %s498_s3  ;;  %p504_p7 = scmp.lt.s32.totalorder %s498_s3, %s498_s3 }
  0x2f   :  { %p505_p8 = por %p504_p7, %p503_p6 }
  0x31   :  { %p506_p9 = pnand %p505_p8, %p499_p5 }
  0x33   :  { %509 = shalt.err (!%p506_p9)
}
  0x34   :  { %25 = dma.hbm_to_vmem [thread:$0]  %s717_s0, 256, %s20_s19, [#allocation3], %s586_s30, %s586_s30, %s587_s6  }
  0x35   :  { %s510_s10 = scalar_lea.hbm %s719_s2, 16 }
  0x36   :  { %p511_p10 = scmp.ne.s32.totalorder %s719_s2, %s510_s10  ;;  %p514_p11 = scmp.lt.u32.totalorder %s510_s10, %s719_s2 }
  0x38   :  { %p516_p12 = pnand %p514_p11, %p511_p10 }
  0x3a   :  { %519 = shalt.err (!%p516_p12)
}
  0x3b   :  { %s520_s15 = scalar_lea.vmem %s45_s22, 16  ;;  %s524_s16 = scalar_lea.vmem %s45_s22, 32 }
  0x3c   :  { %p521_p13 = scmp.ne.s32.totalorder %s45_s22, %s520_s15  ;;  %p525_p0 = scmp.lt.s32.totalorder %s45_s22, %s45_s22 }
  0x3d   :  { %p526_p1 = scmp.lt.s32.totalorder %s524_s16, %s520_s15 }
  0x3f   :  { %p527_p2 = por %p526_p1, %p525_p0 }
  0x41   :  { %p528_p3 = pnand %p527_p2, %p521_p13 }
  0x43   :  { %531 = shalt.err (!%p528_p3)
}
  0x44   :  { %47 = dma.hbm_to_vmem [thread:$0]  %s719_s2, 16, %s45_s22, [#allocation6]  }
  0x45   :  { %s590_s17 = smov [#allocation10]   ;;  %s532_s23 = scalar_lea.hbm %s721_s4, 16 }
  0x46   :  { %s66_s18 = sshll.u32 %s590_s17, 4  ;;  %p533_p4 = scmp.ne.s32.totalorder %s721_s4, %s532_s23  ;;  %s67_s18 = int_to_ptr.vmem [resolvable:$true] %s66_s18 }
  0x47   :  { %p536_p5 = scmp.lt.u32.totalorder %s532_s23, %s721_s4 }
  0x49   :  { %p538_p6 = pnand %p536_p5, %p533_p4 }
  0x4b   :  { %541 = shalt.err (!%p538_p6)
}
  0x4c   :  { %s542_s28 = scalar_lea.vmem %s67_s18, 16  ;;  %s546_s2 = scalar_lea.vmem %s67_s18, 32 }
  0x4d   :  { %p543_p7 = scmp.ne.s32.totalorder %s67_s18, %s542_s28  ;;  %p547_p8 = scmp.lt.s32.totalorder %s67_s18, %s67_s18 }
  0x4e   :  { %p548_p9 = scmp.lt.s32.totalorder %s546_s2, %s542_s28 }
  0x50   :  { %p549_p10 = por %p548_p9, %p547_p8 }
  0x52   :  { %p550_p11 = pnand %p549_p10, %p543_p7 }
  0x54   :  { %553 = shalt.err (!%p550_p11)
}
  0x55   :  { %69 = dma.hbm_to_vmem [thread:$0]  %s721_s4, 16, %s67_s18, [#allocation9]  }
  0x56   :  { %576 = dma.done.wait [#allocation3], 256  }
  0x57   :  { %577 = vsyncadd [#allocation3], 4294967040 }
  0x58   :  { %578 = dma.done.wait [#allocation6], 528  }
  0x59   :  { %579 = vsyncadd [#allocation6], 4294966768 }
  0x5a   :  { %580 = dma.done.wait [#allocation9], 1040  }
  0x5b   :  { %581 = vsyncadd [#allocation9], 4294966256  ;;  %vm98_vm0 = vcmask 261120   ;;  %v87_v0 = vld [vmem:[#allocation5] sm:$0xff]  ;;  %v88_v1 = vld [vmem:[#allocation5 + $0x8] sm:$0xff]  ;;  %vm249_vm3 = vcmask 523264  }
  0x5c   :  { %v89_v2 = vld [vmem:[#allocation5 + $0x10] sm:$0xff]  ;;  %v404_v3 = vpack.c.bf16 %v88_v1, %v87_v0  ;;  %v90_v4 = vld [vmem:[#allocation5 + $0x18] sm:$0xff]  ;;  %v234_v8 = vld [vmem:[#allocation8] sm:$0xff]  ;;  %s591_s4 = smov [#allocation11]  }
  0x5d   :  { %v85_v5 = vld [vmem:[#allocation2] sm:$0xff]  ;;  %v408_v6 = vpack.c.bf16 %v90_v4, %v89_v2  ;;  %v86_v7 = vld [vmem:[#allocation2 + $0x8] sm:$0xff]  ;;  %v238_v14 = vld [vmem:[#allocation8 + $0x20] sm:$0xff]  ;;  %s338_s3 = sshll.u32 %s591_s4, 4  ;;  %s339_s3 = int_to_ptr.vmem [resolvable:$true] %s338_s3 }
  0x5e   :  { %382 = vmatprep.mubr.msk.f32.mxu0 %vm98_vm0, %v85_v5  ;;  %405 = vmatprep.subr.bf16.mxu0 %v404_v3  ;;  %v235_v9 = vld [vmem:[#allocation8 + $0x8] sm:$0xff]  ;;  %v236_v11 = vld [vmem:[#allocation8 + $0x10] sm:$0xff]  ;;  %v237_v12 = vld [vmem:[#allocation8 + $0x18] sm:$0xff]  ;;  %s554_s21 = scalar_lea.vmem %s339_s3, 256  ;;  %p559_p13 = scmp.lt.s32.totalorder %s339_s3, %s339_s3 }
  0x5f   :  { %407 = vmatpush3.bf16.msra.mxu0 %v404_v3  ;;  %v412_v10 = vpack.c.bf16 %v235_v9, %v234_v8  ;;  %v416_v13 = vpack.c.bf16 %v237_v12, %v236_v11  ;;  %v239_v15 = vld [vmem:[#allocation8 + $0x28] sm:$0xff]  ;;  %v240_v17 = vld [vmem:[#allocation8 + $0x30] sm:$0xff]  ;;  %v241_v18 = vld [vmem:[#allocation8 + $0x38] sm:$0xff]  ;;  %p555_p12 = scmp.ne.s32.totalorder %s339_s3, %s554_s21  ;;  %p560_p0 = scmp.lt.s32.totalorder %s554_s21, %s554_s21 }
  0x60   :  { %409 = vmatprep.subr.bf16.mxu0 %v408_v6  ;;  %v420_v16 = vpack.c.bf16 %v239_v15, %v238_v14  ;;  %v424_v19 = vpack.c.bf16 %v241_v18, %v240_v17  ;;  %v352_v20 = vld [vmem:[#allocation7] ss:$0 sm:$0xff]  ;;  %v355_v11 = vld [vmem:[#allocation10] ss:$0 sm:$0xff] }
  0x61   :  { %413 = vmatprep.subr.bf16.mxu1 %v412_v10  ;;  %p561_p1 = por %p560_p0, %p559_p13 }
  0x62   :  { %415 = vmatpush3.bf16.msra.mxu1 %v412_v10 }
  0x63   :  { %411 = vmatpush3.bf16.msra.mxu0 %v408_v6  ;;  %417 = vmatprep.subr.bf16.mxu1 %v416_v13  ;;  %p562_p2 = pnand %p561_p1, %p555_p12 }
  0x66   :  { %383 = vmatmul.mubr.msk.f32.vlgmr.msra.gmra.mrb[0].mxu0 %vm98_vm0, %v86_v7  ;;  %419 = vmatpush3.bf16.msra.mxu1 %v416_v13 }
  0x67   :  { %421 = vmatprep.subr.bf16.mxu1 %v420_v16 }
  0x6a   :  { %423 = vmatpush3.bf16.msra.mxu1 %v420_v16 }
  0x6b   :  { %425 = vmatprep.subr.bf16.mxu1 %v424_v19 }
  0x6e   :  { %427 = vmatpush3.bf16.msra.mxu1 %v424_v19 }
 0x139   :  { %v384_v21 = vpop.f32.mrb[0].mxu0 }
 0x13a   :  { %v177_v22 = vadd.f32 %v384_v21, %v352_v20  ;;  %v171_v23 = vpop.f32.mrb[1].mxu0 }
 0x13b   :  { %v172_v24 = vadd.f32 %v352_v20, %v171_v23 }
 0x13c   :  { %v183_v25 = vmul.f32 0.70710677, %v177_v22  ;;  %v181_v8 = vmul.f32 0.5, %v177_v22 }
 0x13d   :  { %v182_v26 = vmul.f32 0.70710677, %v172_v24  ;;  %v180_v6 = vmul.f32 0.5, %v172_v24 }
 0x13e   :  { %v185_v27 = vand.u32 2147483647, %v183_v25  ;;  %vm225_vm1 = vcmp.lt.f32.partialorder %v183_v25, 0.0 }
 0x13f   :  { %v184_v28 = vand.u32 2147483647, %v182_v26  ;;  %vm224_vm2 = vcmp.lt.f32.partialorder %v182_v26, 0.0 }
 0x140   :  { %v187_v29 = vmul.f32 0.3275911, %v185_v27  ;;  %v213_v33 = vsub.f32 0.0, %v185_v27 }
 0x141   :  { %v186_v30 = vmul.f32 0.3275911, %v184_v28  ;;  %v212_v34 = vsub.f32 0.0, %v184_v28 }
 0x142   :  { %v189_v31 = vadd.f32 1.0, %v187_v29  ;;  %v215_v36 = vmul.f32 %v213_v33, %v185_v27 }
 0x143   :  { %v188_v32 = vadd.f32 1.0, %v186_v30  ;;  %v214_v39 = vmul.f32 %v212_v34, %v184_v28 }
 0x144   :  { %436 = vrcp.f32 %v189_v31  ;;  %v218_v42 = vmul.f32 1.442695, %v215_v36 }
 0x145   :  { %438 = vrcp.f32 %v188_v32  ;;  %v216_v45 = vmul.f32 1.442695, %v214_v39 }
 0x146   :  { %440 = vpow2.f32 %v218_v42 }
 0x147   :  { %442 = vpow2.f32 %v216_v45 }
 0x14e   :  { %v437_v35 = vpop.eup %436 }
 0x14f   :  { %v439_v37 = vpop.eup %438  ;;  %v195_v38 = vmul.f32 1.0614054, %v437_v35 }
 0x150   :  { %v194_v40 = vmul.f32 1.0614054, %v439_v37  ;;  %v441_v58 = vpop.eup %440 }
 0x151   :  { %v197_v41 = vadd.f32 -1.4531521, %v195_v38  ;;  %v443_v60 = vpop.eup %442 }
 0x152   :  { %v196_v43 = vadd.f32 -1.4531521, %v194_v40 }
 0x153   :  { %v199_v44 = vmul.f32 %v437_v35, %v197_v41 }
 0x154   :  { %v198_v46 = vmul.f32 %v439_v37, %v196_v43 }
 0x155   :  { %v201_v47 = vadd.f32 1.4214138, %v199_v44 }
 0x156   :  { %v200_v48 = vadd.f32 1.4214138, %v198_v46 }
 0x157   :  { %v203_v49 = vmul.f32 %v437_v35, %v201_v47 }
 0x158   :  { %v202_v50 = vmul.f32 %v439_v37, %v200_v48 }
 0x159   :  { %v205_v51 = vadd.f32 -0.28449672, %v203_v49 }
 0x15a   :  { %v204_v52 = vadd.f32 -0.28449672, %v202_v50 }
 0x15b   :  { %v207_v53 = vmul.f32 %v437_v35, %v205_v51 }
 0x15c   :  { %v206_v54 = vmul.f32 %v439_v37, %v204_v52 }
 0x15d   :  { %v209_v55 = vadd.f32 0.2548296, %v207_v53 }
 0x15e   :  { %v208_v56 = vadd.f32 0.2548296, %v206_v54 }
 0x15f   :  { %v211_v57 = vmul.f32 %v437_v35, %v209_v55 }
 0x160   :  { %v210_v59 = vmul.f32 %v439_v37, %v208_v56 }
 0x161   :  { %v221_v61 = vmul.f32 %v441_v58, %v211_v57 }
 0x162   :  { %v220_v62 = vmul.f32 %v443_v60, %v210_v59 }
 0x163   :  { %v223_v63 = vsub.f32 1.0, %v221_v61 }
 0x164   :  { %v222_v0 = vsub.f32 1.0, %v220_v62 }
 0x165   :  { %v227_v1 = vsub.f32 0.0, %v223_v63 }
 0x166   :  { %v226_v2 = vsub.f32 0.0, %v222_v0 }
 0x167   :  { %v229_v3 = vsel %vm225_vm1, %v227_v1, %v223_v63 }
 0x168   :  { %v231_v4 = vadd.f32 1.0, %v229_v3  ;;  %v228_v5 = vsel %vm224_vm2, %v226_v2, %v222_v0 }
 0x169   :  { %v230_v7 = vadd.f32 1.0, %v228_v5 }
 0x16a   :  { %v233_v10 = vmul.f32 %v231_v4, %v181_v8 }
 0x16b   :  { %v232_v9 = vmul.f32 %v230_v7, %v180_v6 }
 0x16d   :  { %401 = vmatprep.mubr.msk.f32.mxu1 %vm249_vm3, %v232_v9 }
 0x16e   :  { %402 = vmatmul.mubr.msk.f32.vlgmr.msra.gmra.mrb[0].mxu1 %vm249_vm3, %v233_v10 }
 0x241   :  { %v403_v12 = vpop.f32.mrb[0].mxu1 }
 0x242   :  { %v328_v13 = vadd.f32 %v403_v12, %v355_v11  ;;  %v322_v14 = vpop.f32.mrb[1].mxu1 }
 0x243   :  { %v323_v15 = vadd.f32 %v355_v11, %v322_v14 }
 0x244   :  { %332 = vst.msk [vmem:[#allocation11 + $0x8] sm:$0xff] %vm98_vm0, %v328_v13 }
 0x245   :  { %331 = vst.msk [vmem:[#allocation11] sm:$0xff] %vm98_vm0, %v323_v15 }
 0x246   :  { %565 = shalt.err (!%p562_p2)
}
 0x247   :  { %s566_s9 = scalar_lea.hbm %s722_s5, 256 }
 0x248   :  { %p567_p3 = scmp.ne.s32.totalorder %s722_s5, %s566_s9  ;;  %p570_p4 = scmp.lt.u32.totalorder %s566_s9, %s722_s5 }
 0x24a   :  { %p572_p5 = pnand %p570_p4, %p567_p3 }
 0x24c   :  { %575 = shalt.err (!%p572_p5)
}
 0x24d   :  { %344 = dma.vmem_to_hbm [thread:$0]  %s339_s3, 256, %s722_s5, [#allocation4], %s586_s30, %s586_s30, %s587_s6  }
 0x24e   :  { %582 = dma.done.wait [#allocation4], 256  }
 0x24f   :  { %583 = vsyncadd [#allocation4], 4294967040 }
 0x250   :  { %348 = vsyncpa [#allocation3], 1 }
 0x251   :  { %349 = vsyncpa [#allocation6], 1 }
 0x252   :  { %350 = vsyncpa [#allocation9], 1 }
 0x253   :  { %351 = vsyncpa [#allocation4], 1 }

</bundles_post_ra>
